<compile_context>
chip_gen: v7x
topology: tpu7x:2x2x1
jax: 0.10.0
libtpu: 0.0.40
codegen_flags: <defaults>
</compile_context>

<pallas_src>
import numpy as np
import jax
import jax.numpy as jnp
from jax.experimental import pallas as pl
from jax.experimental.pallas import tpu as pltpu

_NEG_INF = -1e30  # large-finite instead of -inf avoids inf-inf NaN corner cases


def _round_up(x, m):
    return (x + m - 1) // m * m


def _vmem_budget_bytes():
    """Generation-aware scoped-VMEM limit (conservative if HW query fails)."""
    cap = None
    try:
        info = pltpu.get_tpu_info()
        cap = getattr(info, "vmem_capacity_bytes", None)
    except Exception:
        cap = None
    if cap is None or cap <= 64 * 1024 * 1024:
        # v7x (64 MiB physical) or unknown: leave headroom for compiler scratch
        # and double-buffering.
        return 48 * 1024 * 1024
    # v5e / v6e: 128 MiB physical.
    return 100 * 1024 * 1024


def _make_query_refine_kernel(scale, tile_n, n_valid, n_pad):
    """Pass 1: online-softmax cross-attention -> q_feat + class logits."""
    needs_mask = n_valid < n_pad

    def kernel(feat_ref, w1_ref, b1_ref, q_ref, wcls_ref, bcls_ref,
               qfeat_ref, cls_ref, m_sc, l_sc, acc_sc):
        ni = pl.program_id(1)

        @pl.when(ni == 0)
        def _init():
            m_sc[...] = jnp.full_like(m_sc, _NEG_INF)
            l_sc[...] = jnp.zeros_like(l_sc)
            acc_sc[...] = jnp.zeros_like(acc_sc)

        # Point embedding: tiny-K matmul on the MXU (bf16 in, f32 acc), relu on VPU.
        feat = feat_ref[0]                                            # (TN, F) bf16
        w1 = w1_ref[...].astype(jnp.bfloat16)                         # (F, D)
        h = jnp.dot(feat, w1, preferred_element_type=jnp.float32) + b1_ref[...]
        h = jnp.maximum(h, 0.0)                                       # (TN, D) f32
        h_bf = h.astype(jnp.bfloat16)

        # 1/sqrt(D) folded into the small (Nq, D) query tile (VPU work on Nq*D
        # elements instead of Nq*TN logits).
        q_bf = (q_ref[...] * scale).astype(jnp.bfloat16)              # (Nq, D)
        # Same contraction pattern as the canonical flash-attention kernel:
        # the large (TN, D) h tile stays the un-transposed MXU operand.
        s = jnp.einsum("qd,nd->qn", q_bf, h_bf,
                       preferred_element_type=jnp.float32)            # (Nq, TN)

        def online_update(s_val):
            # Online softmax update over the point axis (statistics in f32).
            m_prev = m_sc[...]
            m_new = jnp.maximum(m_prev, jnp.max(s_val, axis=-1, keepdims=True))
            alpha = jnp.exp(m_prev - m_new)
            p = jnp.exp(s_val - m_new)                                # (Nq, TN)
            l_sc[...] = alpha * l_sc[...] + jnp.sum(p, axis=-1, keepdims=True)
            # p cast to bf16 before the MXU (intentional, bf16-level tolerance).
            acc_sc[...] = alpha * acc_sc[...] + jnp.dot(
                p.astype(jnp.bfloat16), h_bf,
                preferred_element_type=jnp.float32)
            m_sc[...] = m_new

        if needs_mask:
            # Only the last point tile contains zero-padded points; gate the
            # iota/where masking out of the steady-state loop.
            is_last = ni == pl.num_programs(1) - 1

            @pl.when(is_last)
            def _last_tile():
                col = (jax.lax.broadcasted_iota(jnp.int32, (1, tile_n), 1)
                       + ni * tile_n)
                online_update(jnp.where(col < n_valid, s, _NEG_INF))

            @pl.when(jnp.logical_not(is_last))
            def _steady_state():
                online_update(s)
        else:
            online_update(s)

        @pl.when(ni == pl.num_programs(1) - 1)
        def _finalize():
            # approx reciprocal (~2^-12 rel err) is within bf16-level tolerance.
            inv_l = pl.reciprocal(l_sc[...], approx=True)             # EUP slot
            q_feat = q_ref[...] + acc_sc[...] * inv_l                 # (Nq, D) f32
            qfeat_ref[0] = q_feat
            cls_ref[0] = (jnp.dot(q_feat.astype(jnp.bfloat16),
                                  wcls_ref[...].astype(jnp.bfloat16),
                                  preferred_element_type=jnp.float32)
                          + bcls_ref[...])

    return kernel


def _mask_kernel(feat_ref, w1_ref, b1_ref, qfeat_ref, mask_ref):
    """Pass 2: recompute h per tile, emit bf16 mask logits as (Nq_pad, TN)."""
    feat = feat_ref[0]                                                # (TN, F) bf16
    w1 = w1_ref[...].astype(jnp.bfloat16)
    h = jnp.maximum(
        jnp.dot(feat, w1, preferred_element_type=jnp.float32) + b1_ref[...],
        0.0)                                                          # (TN, D)
    qf = qfeat_ref[0].astype(jnp.bfloat16)                            # (Nq, D)
    # Lane axis = point axis (multiple of 128) -> unmasked bf16 stores.
    mask_ref[0] = jnp.einsum("qd,nd->qn", qf, h.astype(jnp.bfloat16),
                             preferred_element_type=jnp.float32
                             ).astype(mask_ref.dtype)                 # (Nq, TN)


def instance_segmentation_forward(x, params, raw_coordinates=None, *,
                                  tile_n=None):
    """x: (B, N, C_in) float point features; raw_coordinates: (B, N, 3) or None."""
    if raw_coordinates is not None:
        feat = jnp.concatenate([x, raw_coordinates], axis=-1)
    else:
        feat = x
    # bf16 feat: halves HBM reads and the VMEM footprint of the lane-padded
    # feat tiles in both passes (kernels accumulate in f32).
    feat = feat.astype(jnp.bfloat16)

    w1 = params["w1"].astype(jnp.float32)
    b1 = params["b1"].astype(jnp.float32)
    queries = params["queries"].astype(jnp.float32)
    wcls = params["wcls"].astype(jnp.float32)
    bcls = params["bcls"].astype(jnp.float32)

    B, N, F = feat.shape
    D = w1.shape[1]
    Nq = queries.shape[0]
    Ncls = wcls.shape[1]
    assert w1.shape[0] == F

    vmem_limit = _vmem_budget_bytes()
    if tile_n is None:
        # ~12 MiB/step footprint at tn=8192; larger tiles on 128 MiB parts.
        tile_n = 16384 if vmem_limit > 64 * 1024 * 1024 else 8192

    # Query axis is only ever the sublane/M dimension -> pad to 16 (covers the
    # f32 (8) and bf16 (16) sublane granularities), NOT to 128.
    nq_pad = _round_up(Nq, 16)
    tn = min(_round_up(tile_n, 128), _round_up(N, 128))
    n_pad = _round_up(N, tn)
    n_tiles = n_pad // tn

    if n_pad != N:
        feat = jnp.pad(feat, ((0, 0), (0, n_pad - N), (0, 0)))
    q_pad = queries if nq_pad == Nq else jnp.pad(
        queries, ((0, nq_pad - Nq), (0, 0)))

    scale = float(1.0 / np.sqrt(D))

    # TODO(synk): on v7x with B == 1, Pass 1's only parallel grid axis has
    # extent 1 (single TensorCore); a 2-way point-axis split with a cross-core
    # softmax combine would be needed to use both cores.

    # ---------- Pass 1: query refinement (online softmax) ----------
    cost1 = pl.CostEstimate(
        flops=int(B * (2 * n_pad * F * D + 4 * nq_pad * D * n_pad
                       + 2 * nq_pad * D * Ncls)),
        transcendentals=int(B * n_pad * nq_pad),
        bytes_accessed=int(2 * B * n_pad * F                       # bf16 feat
                           + 4 * (F * D + D + nq_pad * D + D * Ncls + Ncls
                                  + B * nq_pad * (D + Ncls))))
    qfeat, class_logits = pl.pallas_call(
        _make_query_refine_kernel(scale, tn, N, n_pad),
        out_shape=(jax.ShapeDtypeStruct((B, nq_pad, D), jnp.float32),
                   jax.ShapeDtypeStruct((B, nq_pad, Ncls), jnp.float32)),
        grid_spec=pltpu.PrefetchScalarGridSpec(
            num_scalar_prefetch=0,
            grid=(B, n_tiles),
            in_specs=[
                pl.BlockSpec((1, tn, F), lambda b, n: (b, n, 0)),
                pl.BlockSpec((F, D), lambda b, n: (0, 0)),
                pl.BlockSpec((1, D), lambda b, n: (0, 0)),
                pl.BlockSpec((nq_pad, D), lambda b, n: (0, 0)),
                pl.BlockSpec((D, Ncls), lambda b, n: (0, 0)),
                pl.BlockSpec((1, Ncls), lambda b, n: (0, 0)),
            ],
            out_specs=[
                pl.BlockSpec((1, nq_pad, D), lambda b, n: (b, 0, 0)),
                pl.BlockSpec((1, nq_pad, Ncls), lambda b, n: (b, 0, 0)),
            ],
            scratch_shapes=[
                pltpu.VMEM((nq_pad, 1), jnp.float32),   # running max
                pltpu.VMEM((nq_pad, 1), jnp.float32),   # running sum
                pltpu.VMEM((nq_pad, D), jnp.float32),   # attn @ h accumulator
            ]),
        compiler_params=pltpu.CompilerParams(
            dimension_semantics=("parallel", "arbitrary"),
            vmem_limit_bytes=vmem_limit),
        cost_estimate=cost1,
    )(feat, w1, b1, q_pad, wcls, bcls)

    # ---------- Pass 2: mask head (bf16, lane axis = points) ----------
    cost2 = pl.CostEstimate(
        flops=int(B * (2 * n_pad * F * D + 2 * n_pad * D * nq_pad)),
        transcendentals=0,
        bytes_accessed=int(2 * B * n_pad * F                        # bf16 feat
                           + 4 * (F * D + D + B * nq_pad * D)
                           + 2 * B * nq_pad * n_pad))               # bf16 mask
    mask_logits = pl.pallas_call(
        _mask_kernel,
        out_shape=jax.ShapeDtypeStruct((B, nq_pad, n_pad), jnp.bfloat16),
        grid_spec=pltpu.PrefetchScalarGridSpec(
            num_scalar_prefetch=0,
            grid=(B, n_tiles),
            in_specs=[
                pl.BlockSpec((1, tn, F), lambda b, n: (b, n, 0)),
                pl.BlockSpec((F, D), lambda b, n: (0, 0)),
                pl.BlockSpec((1, D), lambda b, n: (0, 0)),
                pl.BlockSpec((1, nq_pad, D), lambda b, n: (b, 0, 0)),
            ],
            out_specs=pl.BlockSpec((1, nq_pad, tn), lambda b, n: (b, 0, n)),
        ),
        compiler_params=pltpu.CompilerParams(
            dimension_semantics=("parallel", "parallel"),
            vmem_limit_bytes=vmem_limit),
        cost_estimate=cost2,
    )(feat, w1, b1, qfeat)

    # Slice padding off the small true-size result, then restore the module's
    # (B, N, Nq) mask orientation / f32 dtype outside the kernel.
    pred_masks = jnp.swapaxes(mask_logits[:, :Nq, :N], 1, 2).astype(jnp.float32)
    return {"pred_masks": pred_masks,
            "pred_logits": class_logits[:, :Nq, :]}


def _reference_forward(x, params, raw_coordinates=None):
    feat = x if raw_coordinates is None else jnp.concatenate(
        [x, raw_coordinates], axis=-1)
    feat = feat.astype(jnp.float32)
    w1, b1, q, wcls, bcls = (params["w1"], params["b1"], params["queries"],
                             params["wcls"], params["bcls"])
    h = jax.nn.relu(jnp.einsum("bnf,fd->bnd", feat, w1) + b1)
    scale = 1.0 / np.sqrt(q.shape[-1])
    attn = jax.nn.softmax(jnp.einsum("qd,bnd->bqn", q, h) * scale, axis=-1)
    qf = q[None] + jnp.einsum("bqn,bnd->bqd", attn, h)
    cls = jnp.einsum("bqd,dc->bqc", qf, wcls) + bcls
    mask = jnp.einsum("bnd,bqd->bnq", h, qf)
    return {"pred_masks": mask, "pred_logits": cls}


def make_params(key, c_in, hidden, num_queries, num_classes, use_coords=True):
    f = c_in + (3 if use_coords else 0)
    k1, k2, k3, k4 = jax.random.split(key, 4)
    return {
        "w1": jax.random.normal(k1, (f, hidden), jnp.float32) * (1.0 / np.sqrt(f)),
        "b1": jnp.zeros((1, hidden), jnp.float32),
        "queries": jax.random.normal(k2, (num_queries, hidden), jnp.float32)
                   * (1.0 / np.sqrt(hidden)),
        "wcls": jax.random.normal(k3, (hidden, num_classes), jnp.float32)
                * (1.0 / np.sqrt(hidden)),
        "bcls": jax.random.normal(k4, (1, num_classes), jnp.float32) * 0.01,
    }


if __name__ == "__main__":
    # N deliberately NOT a multiple of the tile to exercise the padding/masking
    # path; tile_n=128 forces several point tiles through the online softmax.
    B, N, C_IN = 2, 400, 13          # batch, points per cloud, feature channels
    HIDDEN, NQ, NCLS = 128, 16, 8    # embed dim, instance queries, classes

    key = jax.random.PRNGKey(0)
    kx, kc, kp = jax.random.split(key, 3)
    x = jax.random.normal(kx, (B, N, C_IN), jnp.float32)
    raw_coordinates = jax.random.uniform(kc, (B, N, 3), jnp.float32)
    params = make_params(kp, C_IN, HIDDEN, NQ, NCLS, use_coords=True)

    out = instance_segmentation_forward(x, params, raw_coordinates, tile_n=128)
    jax.block_until_ready(out)

    ref = _reference_forward(x, params, raw_coordinates)
    # bf16 MXU inputs + bf16 mask output (f32 accumulation / softmax stats)
    # -> bf16-level tolerances.
    np.testing.assert_allclose(np.asarray(out["pred_logits"]),
                               np.asarray(ref["pred_logits"]),
                               rtol=3e-2, atol=1e-1)
    np.testing.assert_allclose(np.asarray(out["pred_masks"]),
                               np.asarray(ref["pred_masks"]),
                               rtol=3e-2, atol=2e-1)

    print("KERNEL_OK")
</pallas_src>

<mosaic_0001>
module attributes {stable_mosaic.version = 11 : i64} {
  func.func @kernel(%arg0: i32, %arg1: i32, %arg2: memref<1x128x16xbf16, #tpu.memory_space<vmem>>, %arg3: memref<16x128xf32, #tpu.memory_space<vmem>>, %arg4: memref<1x128xf32, #tpu.memory_space<vmem>>, %arg5: memref<16x128xf32, #tpu.memory_space<vmem>>, %arg6: memref<128x8xf32, #tpu.memory_space<vmem>>, %arg7: memref<1x8xf32, #tpu.memory_space<vmem>>, %arg8: memref<1x16x128xf32, #tpu.memory_space<vmem>>, %arg9: memref<1x16x8xf32, #tpu.memory_space<vmem>>, %arg10: memref<16x1xf32, #tpu.memory_space<vmem>>, %arg11: memref<16x1xf32, #tpu.memory_space<vmem>>, %arg12: memref<16x128xf32, #tpu.memory_space<vmem>>) attributes {dimension_semantics = [#tpu.dimension_semantics<parallel>, #tpu.dimension_semantics<arbitrary>], iteration_bounds = array<i64: 2, 4>, scalar_prefetch = 0 : i64, scratch_operands = 3 : i64, tpu.core_type = #tpu.core_type<tc>, window_params = [{transform_indices = @transform_0, window_bounds = array<i64: 1, 128, 16>}, {pipeline_mode = #tpu.pipeline_mode<synchronous>, transform_indices = @transform_1, window_bounds = array<i64: 16, 128>}, {pipeline_mode = #tpu.pipeline_mode<synchronous>, transform_indices = @transform_2, window_bounds = array<i64: 1, 128>}, {pipeline_mode = #tpu.pipeline_mode<synchronous>, transform_indices = @transform_3, window_bounds = array<i64: 16, 128>}, {pipeline_mode = #tpu.pipeline_mode<synchronous>, transform_indices = @transform_4, window_bounds = array<i64: 128, 8>}, {pipeline_mode = #tpu.pipeline_mode<synchronous>, transform_indices = @transform_5, window_bounds = array<i64: 1, 8>}, {transform_indices = @transform_6, window_bounds = array<i64: 1, 16, 128>}, {transform_indices = @transform_7, window_bounds = array<i64: 1, 16, 8>}]} {
    %c0_i32 = arith.constant 0 : i32
    %0 = arith.cmpi eq, %arg1, %c0_i32 : i32
    %1 = arith.extui %0 : i1 to i32
    %c0_i32_0 = arith.constant 0 : i32
    %2 = arith.cmpi ne, %1, %c0_i32_0 : i32
    scf.if %2 {
      %cst_16 = arith.constant -1.000000e+30 : f32
      %28 = vector.broadcast %cst_16 : f32 to vector<16x1xf32>
      %c0_17 = arith.constant 0 : index
      %c0_18 = arith.constant 0 : index
      %29 = vector.load %arg10[%c0_17, %c0_18] : memref<16x1xf32, #tpu.memory_space<vmem>>, vector<16x1xf32>
      tpu.vector_store %arg10[%c0_17, %c0_18], %28 {strides = array<i32>} : memref<16x1xf32, #tpu.memory_space<vmem>>, vector<16x1xf32>,
      %cst_19 = arith.constant 0.000000e+00 : f32
      %30 = vector.broadcast %cst_19 : f32 to vector<16x1xf32>
      %c0_20 = arith.constant 0 : index
      %c0_21 = arith.constant 0 : index
      %31 = vector.load %arg11[%c0_20, %c0_21] : memref<16x1xf32, #tpu.memory_space<vmem>>, vector<16x1xf32>
      tpu.vector_store %arg11[%c0_20, %c0_21], %30 {strides = array<i32>} : memref<16x1xf32, #tpu.memory_space<vmem>>, vector<16x1xf32>,
      %cst_22 = arith.constant 0.000000e+00 : f32
      %32 = vector.broadcast %cst_22 : f32 to vector<16x128xf32>
      %c0_23 = arith.constant 0 : index
      %c0_24 = arith.constant 0 : index
      %33 = vector.load %arg12[%c0_23, %c0_24] : memref<16x128xf32, #tpu.memory_space<vmem>>, vector<16x128xf32>
      tpu.vector_store %arg12[%c0_23, %c0_24], %32 {strides = array<i32>} : memref<16x128xf32, #tpu.memory_space<vmem>>, vector<16x128xf32>,
    } else {
    }
    %c0 = arith.constant 0 : index
    %c0_1 = arith.constant 0 : index
    %c0_2 = arith.constant 0 : index
    %3 = vector.load %arg2[%c0, %c0_1, %c0_2] : memref<1x128x16xbf16, #tpu.memory_space<vmem>>, vector<1x128x16xbf16>
    %4 = vector.shape_cast %3 : vector<1x128x16xbf16> to vector<128x16xbf16>
    %c0_3 = arith.constant 0 : index
    %c0_4 = arith.constant 0 : index
    %5 = vector.load %arg3[%c0_3, %c0_4] : memref<16x128xf32, #tpu.memory_space<vmem>>, vector<16x128xf32>
    %6 = arith.truncf %5 : vector<16x128xf32> to vector<16x128xbf16>
    %cst = arith.constant dense<0.000000e+00> : vector<128x128xf32>
    %7 = tpu.matmul %4, %6, %cst {dimension_numbers = #tpu.dot_dimension_numbers<[1], [0], [0], [1], [0, 0, 1, 1], [], []>} : vector<128x16xbf16>, vector<16x128xbf16>, vector<128x128xf32> -> vector<128x128xf32>
    %c0_5 = arith.constant 0 : index
    %c0_6 = arith.constant 0 : index
    %8 = vector.load %arg4[%c0_5, %c0_6] : memref<1x128xf32, #tpu.memory_space<vmem>>, vector<1x128xf32>
    %9 = vector.broadcast %8 : vector<1x128xf32> to vector<128x128xf32>
    %10 = arith.addf %7, %9 : vector<128x128xf32>
    %cst_7 = arith.constant 0.000000e+00 : f32
    %11 = vector.broadcast %cst_7 : f32 to vector<128x128xf32>
    %12 = arith.maximumf %10, %11 : vector<128x128xf32>
    %13 = arith.truncf %12 : vector<128x128xf32> to vector<128x128xbf16>
    %c0_8 = arith.constant 0 : index
    %c0_9 = arith.constant 0 : index
    %14 = vector.load %arg5[%c0_8, %c0_9] : memref<16x128xf32, #tpu.memory_space<vmem>>, vector<16x128xf32>
    %cst_10 = arith.constant 0.0883883461 : f32
    %15 = vector.broadcast %cst_10 : f32 to vector<16x128xf32>
    %16 = arith.mulf %14, %15 : vector<16x128xf32>
    %17 = arith.truncf %16 : vector<16x128xf32> to vector<16x128xbf16>
    "tpu.trace_start"() <{level = 10 : i32, message = "qd,nd->qn"}> : () -> ()
    %cst_11 = arith.constant dense<0.000000e+00> : vector<16x128xf32>
    %18 = tpu.matmul %17, %13, %cst_11 {dimension_numbers = #tpu.dot_dimension_numbers<[1], [1], [0], [0], [0, 0, 1, 0], [], []>} : vector<16x128xbf16>, vector<128x128xbf16>, vector<16x128xf32> -> vector<16x128xf32>
    %c3_i32 = arith.constant 3 : i32
    "tpu.trace_stop"() : () -> ()
    %19 = arith.cmpi eq, %arg1, %c3_i32 : i32
    %20 = arith.extui %19 : i1 to i32
    %c0_i32_12 = arith.constant 0 : i32
    %21 = arith.cmpi ne, %20, %c0_i32_12 : i32
    scf.if %21 {
      %28 = tpu.iota {dimensions = array<i32: 1>} : vector<1x128xi32>
      %c128_i32 = arith.constant 128 : i32
      %29 = arith.muli %arg1, %c128_i32 : i32
      %30 = vector.broadcast %29 : i32 to vector<1x128xi32>
      %31 = arith.addi %28, %30 : vector<1x128xi32>
      %c400_i32 = arith.constant 400 : i32
      %32 = vector.broadcast %c400_i32 : i32 to vector<1x128xi32>
      %33 = arith.cmpi slt, %31, %32 : vector<1x128xi32>
      %cst_16 = arith.constant -1.000000e+30 : f32
      %34 = vector.shape_cast %33 : vector<1x128xi1> to vector<1x128xi1>
      %35 = vector.broadcast %34 : vector<1x128xi1> to vector<16x128xi1>
      %36 = vector.broadcast %cst_16 : f32 to vector<16x128xf32>
      %37 = arith.select %35, %18, %36 : vector<16x128xi1>, vector<16x128xf32>
      %c0_17 = arith.constant 0 : index
      %c0_18 = arith.constant 0 : index
      %38 = vector.load %arg10[%c0_17, %c0_18] : memref<16x1xf32, #tpu.memory_space<vmem>>, vector<16x1xf32>
      %cst_19 = arith.constant dense<0xFF800000> : vector<16xf32>
      %39 = vector.multi_reduction <maximumf>, %37, %cst_19 [1] : vector<16x128xf32> to vector<16xf32>
      %40 = vector.shape_cast %39 : vector<16xf32> to vector<16x1xf32>
      %41 = arith.maximumf %38, %40 : vector<16x1xf32>
      %42 = arith.subf %38, %41 : vector<16x1xf32>
      %43 = math.exp %42 : vector<16x1xf32>
      %44 = vector.broadcast %41 : vector<16x1xf32> to vector<16x128xf32>
      %45 = arith.subf %37, %44 : vector<16x128xf32>
      %46 = math.exp %45 : vector<16x128xf32>
      %c0_20 = arith.constant 0 : index
      %c0_21 = arith.constant 0 : index
      %47 = vector.load %arg11[%c0_20, %c0_21] : memref<16x1xf32, #tpu.memory_space<vmem>>, vector<16x1xf32>
      %48 = arith.mulf %43, %47 : vector<16x1xf32>
      %cst_22 = arith.constant dense<0.000000e+00> : vector<16xf32>
      %49 = vector.multi_reduction <add>, %46, %cst_22 [1] : vector<16x128xf32> to vector<16xf32>
      %50 = vector.shape_cast %49 : vector<16xf32> to vector<16x1xf32>
      %51 = arith.addf %48, %50 : vector<16x1xf32>
      %c0_23 = arith.constant 0 : index
      %c0_24 = arith.constant 0 : index
      %52 = vector.load %arg11[%c0_23, %c0_24] : memref<16x1xf32, #tpu.memory_space<vmem>>, vector<16x1xf32>
      tpu.vector_store %arg11[%c0_23, %c0_24], %51 {strides = array<i32>} : memref<16x1xf32, #tpu.memory_space<vmem>>, vector<16x1xf32>,
      %c0_25 = arith.constant 0 : index
      %c0_26 = arith.constant 0 : index
      %53 = vector.load %arg12[%c0_25, %c0_26] : memref<16x128xf32, #tpu.memory_space<vmem>>, vector<16x128xf32>
      %54 = vector.broadcast %43 : vector<16x1xf32> to vector<16x128xf32>
      %55 = arith.mulf %54, %53 : vector<16x128xf32>
      %56 = arith.truncf %46 : vector<16x128xf32> to vector<16x128xbf16>
      %cst_27 = arith.constant dense<0.000000e+00> : vector<16x128xf32>
      %57 = tpu.matmul %56, %13, %cst_27 {dimension_numbers = #tpu.dot_dimension_numbers<[1], [0], [0], [1], [0, 0, 1, 1], [], []>} : vector<16x128xbf16>, vector<128x128xbf16>, vector<16x128xf32> -> vector<16x128xf32>
      %58 = arith.addf %55, %57 : vector<16x128xf32>
      %c0_28 = arith.constant 0 : index
      %c0_29 = arith.constant 0 : index
      %59 = vector.load %arg12[%c0_28, %c0_29] : memref<16x128xf32, #tpu.memory_space<vmem>>, vector<16x128xf32>
      tpu.vector_store %arg12[%c0_28, %c0_29], %58 {strides = array<i32>} : memref<16x128xf32, #tpu.memory_space<vmem>>, vector<16x128xf32>,
      %c0_30 = arith.constant 0 : index
      %c0_31 = arith.constant 0 : index
      %60 = vector.load %arg10[%c0_30, %c0_31] : memref<16x1xf32, #tpu.memory_space<vmem>>, vector<16x1xf32>
      tpu.vector_store %arg10[%c0_30, %c0_31], %41 {strides = array<i32>} : memref<16x1xf32, #tpu.memory_space<vmem>>, vector<16x1xf32>,
    } else {
    }
    %true = arith.constant true
    %22 = arith.xori %19, %true : i1
    %23 = arith.extui %22 : i1 to i32
    %c0_i32_13 = arith.constant 0 : i32
    %24 = arith.cmpi ne, %23, %c0_i32_13 : i32
    scf.if %24 {
      %c0_16 = arith.constant 0 : index
      %c0_17 = arith.constant 0 : index
      %28 = vector.load %arg10[%c0_16, %c0_17] : memref<16x1xf32, #tpu.memory_space<vmem>>, vector<16x1xf32>
      %cst_18 = arith.constant dense<0xFF800000> : vector<16xf32>
      %29 = vector.multi_reduction <maximumf>, %18, %cst_18 [1] : vector<16x128xf32> to vector<16xf32>
      %30 = vector.shape_cast %29 : vector<16xf32> to vector<16x1xf32>
      %31 = arith.maximumf %28, %30 : vector<16x1xf32>
      %32 = arith.subf %28, %31 : vector<16x1xf32>
      %33 = math.exp %32 : vector<16x1xf32>
      %34 = vector.broadcast %31 : vector<16x1xf32> to vector<16x128xf32>
      %35 = arith.subf %18, %34 : vector<16x128xf32>
      %36 = math.exp %35 : vector<16x128xf32>
      %c0_19 = arith.constant 0 : index
      %c0_20 = arith.constant 0 : index
      %37 = vector.load %arg11[%c0_19, %c0_20] : memref<16x1xf32, #tpu.memory_space<vmem>>, vector<16x1xf32>
      %38 = arith.mulf %33, %37 : vector<16x1xf32>
      %cst_21 = arith.constant dense<0.000000e+00> : vector<16xf32>
      %39 = vector.multi_reduction <add>, %36, %cst_21 [1] : vector<16x128xf32> to vector<16xf32>
      %40 = vector.shape_cast %39 : vector<16xf32> to vector<16x1xf32>
      %41 = arith.addf %38, %40 : vector<16x1xf32>
      %c0_22 = arith.constant 0 : index
      %c0_23 = arith.constant 0 : index
      %42 = vector.load %arg11[%c0_22, %c0_23] : memref<16x1xf32, #tpu.memory_space<vmem>>, vector<16x1xf32>
      tpu.vector_store %arg11[%c0_22, %c0_23], %41 {strides = array<i32>} : memref<16x1xf32, #tpu.memory_space<vmem>>, vector<16x1xf32>,
      %c0_24 = arith.constant 0 : index
      %c0_25 = arith.constant 0 : index
      %43 = vector.load %arg12[%c0_24, %c0_25] : memref<16x128xf32, #tpu.memory_space<vmem>>, vector<16x128xf32>
      %44 = vector.broadcast %33 : vector<16x1xf32> to vector<16x128xf32>
      %45 = arith.mulf %44, %43 : vector<16x128xf32>
      %46 = arith.truncf %36 : vector<16x128xf32> to vector<16x128xbf16>
      %cst_26 = arith.constant dense<0.000000e+00> : vector<16x128xf32>
      %47 = tpu.matmul %46, %13, %cst_26 {dimension_numbers = #tpu.dot_dimension_numbers<[1], [0], [0], [1], [0, 0, 1, 1], [], []>} : vector<16x128xbf16>, vector<128x128xbf16>, vector<16x128xf32> -> vector<16x128xf32>
      %48 = arith.addf %45, %47 : vector<16x128xf32>
      %c0_27 = arith.constant 0 : index
      %c0_28 = arith.constant 0 : index
      %49 = vector.load %arg12[%c0_27, %c0_28] : memref<16x128xf32, #tpu.memory_space<vmem>>, vector<16x128xf32>
      tpu.vector_store %arg12[%c0_27, %c0_28], %48 {strides = array<i32>} : memref<16x128xf32, #tpu.memory_space<vmem>>, vector<16x128xf32>,
      %c0_29 = arith.constant 0 : index
      %c0_30 = arith.constant 0 : index
      %50 = vector.load %arg10[%c0_29, %c0_30] : memref<16x1xf32, #tpu.memory_space<vmem>>, vector<16x1xf32>
      tpu.vector_store %arg10[%c0_29, %c0_30], %31 {strides = array<i32>} : memref<16x1xf32, #tpu.memory_space<vmem>>, vector<16x1xf32>,
    } else {
    }
    %c3_i32_14 = arith.constant 3 : i32
    %25 = arith.cmpi eq, %arg1, %c3_i32_14 : i32
    %26 = arith.extui %25 : i1 to i32
    %c0_i32_15 = arith.constant 0 : i32
    %27 = arith.cmpi ne, %26, %c0_i32_15 : i32
    scf.if %27 {
      %c0_16 = arith.constant 0 : index
      %c0_17 = arith.constant 0 : index
      %28 = vector.load %arg11[%c0_16, %c0_17] : memref<16x1xf32, #tpu.memory_space<vmem>>, vector<16x1xf32>
      %29 = tpu.reciprocal %28 {approx = true} : vector<16x1xf32> -> vector<16x1xf32>
      %c0_18 = arith.constant 0 : index
      %c0_19 = arith.constant 0 : index
      %30 = vector.load %arg5[%c0_18, %c0_19] : memref<16x128xf32, #tpu.memory_space<vmem>>, vector<16x128xf32>
      %c0_20 = arith.constant 0 : index
      %c0_21 = arith.constant 0 : index
      %31 = vector.load %arg12[%c0_20, %c0_21] : memref<16x128xf32, #tpu.memory_space<vmem>>, vector<16x128xf32>
      %32 = vector.broadcast %29 : vector<16x1xf32> to vector<16x128xf32>
      %33 = arith.mulf %31, %32 : vector<16x128xf32>
      %34 = arith.addf %30, %33 : vector<16x128xf32>
      %c0_22 = arith.constant 0 : index
      %c0_23 = arith.constant 0 : index
      %c0_24 = arith.constant 0 : index
      %35 = vector.load %arg8[%c0_22, %c0_23, %c0_24] : memref<1x16x128xf32, #tpu.memory_space<vmem>>, vector<1x16x128xf32>
      %36 = vector.shape_cast %35 : vector<1x16x128xf32> to vector<16x128xf32>
      %37 = vector.shape_cast %34 : vector<16x128xf32> to vector<1x16x128xf32>
      tpu.vector_store %arg8[%c0_22, %c0_23, %c0_24], %37 {strides = array<i32>} : memref<1x16x128xf32, #tpu.memory_space<vmem>>, vector<1x16x128xf32>,
      %38 = arith.truncf %34 : vector<16x128xf32> to vector<16x128xbf16>
      %c0_25 = arith.constant 0 : index
      %c0_26 = arith.constant 0 : index
      %39 = vector.load %arg6[%c0_25, %c0_26] : memref<128x8xf32, #tpu.memory_space<vmem>>, vector<128x8xf32>
      %40 = arith.truncf %39 : vector<128x8xf32> to vector<128x8xbf16>
      %cst_27 = arith.constant dense<0.000000e+00> : vector<16x8xf32>
      %41 = tpu.matmul %38, %40, %cst_27 {dimension_numbers = #tpu.dot_dimension_numbers<[1], [0], [0], [1], [0, 0, 1, 1], [], []>} : vector<16x128xbf16>, vector<128x8xbf16>, vector<16x8xf32> -> vector<16x8xf32>
      %c0_28 = arith.constant 0 : index
      %c0_29 = arith.constant 0 : index
      %42 = vector.load %arg7[%c0_28, %c0_29] : memref<1x8xf32, #tpu.memory_space<vmem>>, vector<1x8xf32>
      %43 = vector.broadcast %42 : vector<1x8xf32> to vector<16x8xf32>
      %44 = arith.addf %41, %43 : vector<16x8xf32>
      %c0_30 = arith.constant 0 : index
      %c0_31 = arith.constant 0 : index
      %c0_32 = arith.constant 0 : index
      %45 = vector.load %arg9[%c0_30, %c0_31, %c0_32] : memref<1x16x8xf32, #tpu.memory_space<vmem>>, vector<1x16x8xf32>
      %46 = vector.shape_cast %45 : vector<1x16x8xf32> to vector<16x8xf32>
      %47 = vector.shape_cast %44 : vector<16x8xf32> to vector<1x16x8xf32>
      tpu.vector_store %arg9[%c0_30, %c0_31, %c0_32], %47 {strides = array<i32>} : memref<1x16x8xf32, #tpu.memory_space<vmem>>, vector<1x16x8xf32>,
    } else {
    }
    return
  }
  func.func @transform_0(%arg0: i32, %arg1: i32) -> (i32, i32, i32) {
    %c0_i32 = arith.constant 0 : i32
    %c0_i32_0 = arith.constant 0 : i32
    return %arg0, %arg1, %c0_i32 : i32, i32, i32
  }
  func.func @transform_1(%arg0: i32, %arg1: i32) -> (i32, i32) {
    %c0_i32 = arith.constant 0 : i32
    %c0_i32_0 = arith.constant 0 : i32
    %c0_i32_1 = arith.constant 0 : i32
    return %c0_i32, %c0_i32_0 : i32, i32
  }
  func.func @transform_2(%arg0: i32, %arg1: i32) -> (i32, i32) {
    %c0_i32 = arith.constant 0 : i32
    %c0_i32_0 = arith.constant 0 : i32
    %c0_i32_1 = arith.constant 0 : i32
    return %c0_i32, %c0_i32_0 : i32, i32
  }
  func.func @transform_3(%arg0: i32, %arg1: i32) -> (i32, i32) {
    %c0_i32 = arith.constant 0 : i32
    %c0_i32_0 = arith.constant 0 : i32
    %c0_i32_1 = arith.constant 0 : i32
    return %c0_i32, %c0_i32_0 : i32, i32
  }
  func.func @transform_4(%arg0: i32, %arg1: i32) -> (i32, i32) {
    %c0_i32 = arith.constant 0 : i32
    %c0_i32_0 = arith.constant 0 : i32
    %c0_i32_1 = arith.constant 0 : i32
    return %c0_i32, %c0_i32_0 : i32, i32
  }
  func.func @transform_5(%arg0: i32, %arg1: i32) -> (i32, i32) {
    %c0_i32 = arith.constant 0 : i32
    %c0_i32_0 = arith.constant 0 : i32
    %c0_i32_1 = arith.constant 0 : i32
    return %c0_i32, %c0_i32_0 : i32, i32
  }
  func.func @transform_6(%arg0: i32, %arg1: i32) -> (i32, i32, i32) {
    %c0_i32 = arith.constant 0 : i32
    %c0_i32_0 = arith.constant 0 : i32
    %c0_i32_1 = arith.constant 0 : i32
    return %arg0, %c0_i32, %c0_i32_0 : i32, i32, i32
  }
  func.func @transform_7(%arg0: i32, %arg1: i32) -> (i32, i32, i32) {
    %c0_i32 = arith.constant 0 : i32
    %c0_i32_0 = arith.constant 0 : i32
    %c0_i32_1 = arith.constant 0 : i32
    return %arg0, %c0_i32, %c0_i32_0 : i32, i32, i32
  }
}

</mosaic_0001>

<bundles_post_ra>
// kernel: tpu_custom_call.1
= control target key start
LH: loop header
LB: loop body
LE: loop exit
PB: predicated region body
PF: predicated region fallthrough
CT: control target
= control target key end

     0   :  { %13 = vsyncpa [#allocation6], 0  ;;  %s1817_s0 = inlined_call_operand.vmem [shape: bf16[2,512,16], index: 0, kind: input, shape index: {}]   ;;  %s1818_s1 = inlined_call_operand.vmem [shape: f32[16,128], index: 1, kind: input, shape index: {}]   ;;  %s1819_s2 = inlined_call_operand.vmem [shape: f32[1,128], index: 2, kind: input, shape index: {}]   ;;  %s1820_s3 = inlined_call_operand.vmem [shape: f32[16,128], index: 3, kind: input, shape index: {}]   ;;  %s1821_s4 = inlined_call_operand.vmem [shape: f32[128,8], index: 4, kind: input, shape index: {}]   ;;  %s1822_s5 = inlined_call_operand.vmem [shape: f32[1,8], index: 5, kind: input, shape index: {}]   ;;  %s1823_s6 = inlined_call_operand.hbm [shape: f32[2,16,128], index: 6, kind: output, shape index: {0}]   ;;  %s1824_s7 = inlined_call_operand.vmem [shape: f32[2,16,8], index: 7, kind: output, shape index: {1}]  }
   0x1   :  { %15 = vsyncpa [#allocation6 + $0x1], 0  ;;  %s1500_s24 = smov 0   ;;  %s1502_s25 = smov 0  }
   0x2   :  { %s1504_s26 = smov 0   ;;  %s1506_s27 = smov 0  }
   0x3   :  { %s1508_s28 = smov 0   ;;  %s1510_s29 = smov 0  }
   0x4   :  { %s1512_s30 = smov 0   ;;  %s1514_s8 = smov 0  }
   0x5 LB: > { %1828 = sst [smem:[#allocation8_spill]] %s1434_s29  ;;  %s1045_s9 = sadd.s32 4294967295, %s1442_s8   ;;  %s1442_s8 = sphi %s1514_s8, %s21_s8   ;;  %s1438_s30 = sphi %s1512_s30, %s1839_s30   ;;  %s1434_s29 = sphi %s1510_s29, %s1838_s29   ;;  %s1430_s28 = sphi %s1508_s28, %s1837_s28   ;;  %s1426_s27 = sphi %s1506_s27, %s1836_s27   ;;  %s1422_s26 = sphi %s1504_s26, %s1842_s26   ;;  %s1418_s25 = sphi %s1502_s25, %s1841_s25   ;;  %s1414_s24 = sphi %s1500_s24, %s1840_s24  }
   0x6   : > { %1829 = sst [smem:[#allocation9_spill]] %s1438_s30  ;;  %s1046_s10 = sadd.s32 4294967294, %s1442_s8  }
   0x7   : > { %s30_s11 = sadd.s32 1, %s1434_s29  ;;  %s33_s12 = sadd.s32 1, %s1438_s30 }
   0x8   : > { %p31_p0 = scmp.ge.s32.totalorder %s30_s11, 4  ;;  %p183_p1 = scmp.ne.s32.totalorder %s1422_s26, %s1418_s25 }
   0x9   : > { %p184_p2 = scmp.eq.s32.totalorder %s1045_s9, 7  ;;  %p189_p4 = scmp.ne.s32.totalorder %s1418_s25, %s1414_s24 }
   0xa   : > { %s1844_s11 = smov (%p31_p0, %s30_s11), 0  ;;  %s1846_s12 = smov (!%p31_p0, %s33_s12), %s1438_s30 }
   0xb   : > { %1830 = sst [smem:[#allocation10_spill]] %s1844_s11  ;;  %p1549_p3 = por %p184_p2, %p183_p1 }
   0xc   : > { %p35_p5 = scmp.ge.s32.totalorder %s1846_s12, 2  ;;  %p190_p6 = scmp.eq.s32.totalorder %s1046_s10, 7 }
   0xd   : > { %p1049_p7 = scmp.ge.s32.totalorder %s1442_s8, 1  ;;  %p262_p8 = scmp.lt.s32.totalorder %s1442_s8, 9 }
   0xe   : > { %s1848_s12 = smov (%p35_p5, %s1846_s12), 0  ;;  %p1559_p9 = por %p190_p6, %p189_p4 }
   0xf   : > { %1832 = sst [smem:[#allocation11_spill]] %s1848_s12  ;;  %p263_p10 = pnand %p1049_p7, %p262_p8 }
  0x10   : > { %s170_s15 = ssub.s32 %s1438_s30, %s1848_s12  ;;  %s173_s16 = sadd.s32 1, %s1422_s26 }
  0x11   : > { %p171_p11 = scmp.eq.s32.totalorder %s170_s15, 0  ;;  %266 = sbr.rel (%p263_p10) target bundleno = 1949 (0x79d), region = 44 }
  0x12   : > { %s293_s18 = sand.u32 (!%p263_p10), 1, %s1418_s25   ;;  %s1051_s19 = sshll.u32 (!%p263_p10), %s1426_s27, 4 }
  0x13   : > { %s1567_s17 = scalar_select %p171_p11, %s1422_s26, %s173_s16  }
  0x14   : > { %s1050_s20 = sshll.u32 (!%p263_p10), %s293_s18, 4  ;;  %p304_p12 = scmp.lt.s32.totalorder (!%p263_p10), %s1430_s28, 1 }
  0x15   : > { %1834 = sst [smem:[#allocation12_spill]] %s1567_s17  ;;  %p306_p13 = scmp.lt.s32.totalorder (!%p263_p10), %s1051_s19, 63 }
  0x16   : > { %s1585_s17 = scalar_lea.vmem (!%p263_p10), [#allocation5], %s1050_s20  ;;  %p1056_p0 = scmp.ne.s32.totalorder (!%p263_p10), %s1426_s27, 0 }
  0x18   : > { %s305_s21 = scalar_select %p304_p12, %s1430_s28, 1 }
  0x19   : > { %s1850_s19 = smov (!%p306_p13, %s1051_s19), 63  ;;  %322 = sbr.rel (%p1056_p0) target bundleno = 32 (0x20), region = 48 }
  0x1a   : > { %s1052_s22 = sshll.u32 %s305_s21, 6  ;;  %s1084_s23 = sshll.u32 %s305_s21, 4  ;;  %vm323_vm0 = vcmask (!%p1056_p0), 7168   ;;  %v1444_v0 = vmov (!%p1056_p0), -1e+30   ;;  %v1445_v1 = vmov (!%p1056_p0), 0.0  }
  0x1b   : > { %s309_s9 = sadd.s32 %s1052_s22, %s1850_s19  ;;  %s1578_s16 = scalar_lea.vmem %s1824_s7, %s1084_s23  ;;  %324 = vst.msk [vmem:[#allocation2] sm:$0xff] (!%p1056_p0), %vm323_vm0, %v1444_v0  ;;  %325 = vst.msk [vmem:[#allocation2 + $0x8] sm:$0xff] (!%p1056_p0), %vm323_vm0, %v1444_v0 }
  0x1c   : > { %s1053_s12 = sshll.u32 %s309_s9, 2  ;;  %326 = vst.msk [vmem:[#allocation3] sm:$0xff] (!%p1056_p0), %vm323_vm0, %v1445_v1  ;;  %327 = vst.msk [vmem:[#allocation3 + $0x8] sm:$0xff] (!%p1056_p0), %vm323_vm0, %v1445_v1 }
  0x1d   : > { %s1583_s29 = scalar_lea.vmem %s1817_s0, %s1053_s12  ;;  %328 = vst [vmem:[#allocation4] sm:$0xff] (!%p1056_p0), %v1445_v1  ;;  %329 = vst [vmem:[#allocation4 + $0x8] sm:$0xff] (!%p1056_p0), %v1445_v1 }
  0x20 PF: > { %v346_v2 = vld [vmem:[%s1818_s1] sm:$0xff]  ;;  %v347_v3 = vld [vmem:[%s1818_s1 + $0x8] sm:$0xff]  ;;  %vm396_vm1 = vcmask 130048   ;;  %v1317_v7 = vld [vmem:[%s1583_s29 + $0x10] sm:$0xff]   ;;  %v1446_v13 = vmov 0.0   ;;  %vm1447_vm2 = vmmov 0  }
  0x21   : > { %v348_v4 = vpack.c.bf16 %v347_v3, %v346_v2  ;;  %v1315_v5 = vld [vmem:[%s1583_s29] sm:$0xff]   ;;  %v1316_v6 = vld [vmem:[%s1583_s29 + $0x8] sm:$0xff]   ;;  %v1318_v8 = vld [vmem:[%s1583_s29 + $0x18] sm:$0xff]   ;;  %1149 = vmatprep.subr.bf16.mxu1 %v1446_v13  ;;  %1165 = vmatprep.mubr.msk.bf16.mxu1 %vm1447_vm2, %v1446_v13  ;;  %p1074_p1 = scmp.ne.s32.totalorder %s1426_s27, 3 }
  0x22   : > { %1133 = vmatprep.mubr.msk.bf16.mxu0 %vm396_vm1, %v1315_v5  ;;  %v1319_v9 = vld [vmem:[%s1583_s29 + $0x20] sm:$0xff]   ;;  %v1320_v10 = vld [vmem:[%s1583_s29 + $0x28] sm:$0xff]   ;;  %v1321_v11 = vld [vmem:[%s1583_s29 + $0x30] sm:$0xff]   ;;  %s1075_s10 = sshll.u32 (!%p1074_p1), %s1426_s27, 7  ;;  %vm642_vm4 = vcmask (!%p1074_p1), 7168   ;;  %vm1450_vm5 = vmmov (!%p1074_p1), 0  }
  0x23   : > { %1131 = vmatprep.subr.bf16.mxu0 %v348_v4  ;;  %v1322_v12 = vld [vmem:[%s1583_s29 + $0x38] sm:$0xff]   ;;  %v1057_v14 = vld [vmem:[%s1819_s2] ss:$0 sm:$0xff] }
  0x24   : > { %1132 = vmatpush3.bf16.msra.mxu0 %v348_v4 }
  0x27   : > { %1134 = vmatmul.mubr.msk.bf16.vlgmr.msra.gmra.mrb[0].mxu0 %vm396_vm1, %v1316_v6 }
  0x28   : > { %1137 = vmatprep.mubr.msk.bf16.mxu0 %vm396_vm1, %v1317_v7  ;;  %v542_v7 = vld [vmem:[%s1820_s3] sm:$0xff] }
  0x2f   : > { %1138 = vmatmul.mubr.msk.bf16.gmra.mrb[4].mxu0 %vm396_vm1, %v1318_v8  ;;  %v543_v8 = vld [vmem:[%s1820_s3 + $0x8] sm:$0xff] }
  0x30   : > { %1141 = vmatprep.mubr.msk.bf16.mxu0 %vm396_vm1, %v1319_v9  ;;  %v544_v9 = vmul.f32 0.088388346, %v542_v7 }
  0x37   : > { %1142 = vmatmul.mubr.msk.bf16.gmra.mrb[8].mxu0 %vm396_vm1, %v1320_v10  ;;  %v545_v10 = vmul.f32 0.088388346, %v543_v8 }
  0x38   : > { %1145 = vmatprep.mubr.msk.bf16.mxu0 %vm396_vm1, %v1321_v11 }
  0x39   : > { %v546_v11 = vpack.c.bf16 %v545_v10, %v544_v9 }
  0x3f   : > { %1146 = vmatmul.mubr.msk.bf16.gmra.mrb[12].mxu0 %vm396_vm1, %v1322_v12 }
  0xfa   : > { %v1135_v15 = vpop.f32.mrb[0].mxu0 }
  0xfb   : > { %v464_v16 = vadd.f32 %v1135_v15, %v1057_v14  ;;  %v455_v17 = vpop.f32.mrb[1].mxu0 }
  0xfc   : > { %v456_v18 = vadd.f32 %v1057_v14, %v455_v17  ;;  %v1136_v19 = vpop.f32.mrb[2].mxu0  ;;  %v595_v17 = vstv (!%p1074_p1), %s1075_s10 }
  0xfd   : > { %v467_v20 = vadd.f32 %v1136_v19, %v1057_v14  ;;  %v458_v21 = vpop.f32.mrb[3].mxu0  ;;  %v520_v23 = vmax.f32 %v464_v16, 0.0  ;;  %v592_v16 = vlaneseq (!%p1074_p1) }
  0xfe   : > { %v459_v22 = vadd.f32 %v1057_v14, %v458_v21  ;;  %v518_v25 = vmax.f32 %v456_v18, 0.0 }
  0xff   : > { %v521_v24 = vmax.f32 %v467_v20, 0.0  ;;  %v593_v18 = vand.u32 (!%p1074_p1), 127, %v592_v16 }
 0x100   : > { %v519_v26 = vmax.f32 %v459_v22, 0.0  ;;  %v1448_v22 = vmov (!%p1074_p1), 0  }
 0x101   : > { %v1615_v27 = vpack.c.bf16 %v521_v24, %v520_v23  ;;  %v596_v19 = vadd.s32 (!%p1074_p1), %v595_v17, %v593_v18  ;;  %1323 = vset.pattern.permute.xlu1 (!%p1074_p1), %v1448_v22  ;;  %1324 = vset.pattern.permute.xlu0 (!%p1074_p1), %v1448_v22  ;;  %v1449_v23 = vmov (!%p1074_p1), 0.0   ;;  %v602_v24 = vld [vmem:[#allocation2] sm:$0xff] (!%p1074_p1) }
 0x102   : > { %v1617_v28 = vpack.c.bf16 %v519_v26, %v518_v25  ;;  %v1139_v29 = vpop.f32.mrb[4].mxu0  ;;  %1169 = vmatprep.subr.bf16.mxu0 (!%p1074_p1), %v1449_v23  ;;  %1185 = vmatprep.mubr.msk.bf16.mxu0 (!%p1074_p1), %vm1450_vm5, %v1449_v23 }
 0x103   : > { %v480_v30 = vadd.f32 %v1139_v29, %v1057_v14  ;;  %v471_v31 = vpop.f32.mrb[5].mxu0  ;;  %vm597_vm3 = vcmp.lt.s32.totalorder (!%p1074_p1), %v596_v19, 400  ;;  %v603_v29 = vld [vmem:[#allocation2 + $0x8] sm:$0xff] (!%p1074_p1) }
 0x104   : > { %1150 = vmatpush3.bf16.xpose.msra.mxu1 %v1617_v28  ;;  %v472_v32 = vadd.f32 %v1057_v14, %v471_v31  ;;  %v1140_v33 = vpop.f32.mrb[6].mxu0  ;;  %1170 = vmatpush3.bf16.msra.mxu0 (!%p1074_p1), %v1617_v28 }
 0x105   : > { %v524_v34 = vmax.f32 %v480_v30, 0.0  ;;  %v483_v35 = vadd.f32 %v1140_v33, %v1057_v14  ;;  %v474_v36 = vpop.f32.mrb[7].mxu0  ;;  %1151 = vmatprep.subr.bf16.mxu1 %v1446_v13  ;;  %1171 = vmatprep.subr.bf16.mxu0 (!%p1074_p1), %v1449_v23 }
 0x106   : > { %v522_v37 = vmax.f32 %v472_v32, 0.0  ;;  %v475_v38 = vadd.f32 %v1057_v14, %v474_v36 }
 0x107   : > { %v525_v39 = vmax.f32 %v483_v35, 0.0 }
 0x108   : > { %v523_v40 = vmax.f32 %v475_v38, 0.0  ;;  %1172 = vmatpush3.bf16.msra.mxu0 (!%p1074_p1), %v1615_v27 }
 0x109   : > { %v1621_v41 = vpack.c.bf16 %v525_v39, %v524_v34  ;;  %1173 = vmatprep.subr.bf16.mxu0 (!%p1074_p1), %v1449_v23 }
 0x10a   : > { %v1623_v42 = vpack.c.bf16 %v523_v40, %v522_v37  ;;  %v1143_v43 = vpop.f32.mrb[8].mxu0 }
 0x10b   : > { %v496_v44 = vadd.f32 %v1143_v43, %v1057_v14  ;;  %v487_v45 = vpop.f32.mrb[9].mxu0 }
 0x10c   : > { %1152 = vmatpush3.bf16.xpose.msra.mxu1 %v1615_v27  ;;  %v488_v46 = vadd.f32 %v1057_v14, %v487_v45  ;;  %v1144_v47 = vpop.f32.mrb[10].mxu0  ;;  %1174 = vmatpush3.bf16.msra.mxu0 (!%p1074_p1), %v1623_v42 }
 0x10d   : > { %1153 = vmatprep.subr.bf16.mxu1 %v1446_v13  ;;  %v528_v48 = vmax.f32 %v496_v44, 0.0  ;;  %v499_v49 = vadd.f32 %v1144_v47, %v1057_v14  ;;  %v490_v50 = vpop.f32.mrb[11].mxu0  ;;  %1175 = vmatprep.subr.bf16.mxu0 (!%p1074_p1), %v1449_v23 }
 0x10e   : > { %v526_v51 = vmax.f32 %v488_v46, 0.0  ;;  %v491_v52 = vadd.f32 %v1057_v14, %v490_v50 }
 0x10f   : > { %v529_v53 = vmax.f32 %v499_v49, 0.0  ;;  %v632_v49 = vld [vmem:[#allocation3] sm:$0xff] (!%p1074_p1) }
 0x110   : > { %v527_v54 = vmax.f32 %v491_v52, 0.0  ;;  %1176 = vmatpush3.bf16.msra.mxu0 (!%p1074_p1), %v1621_v41  ;;  %v633_v52 = vld [vmem:[#allocation3 + $0x8] sm:$0xff] (!%p1074_p1) }
 0x111   : > { %v1627_v55 = vpack.c.bf16 %v529_v53, %v528_v48  ;;  %1177 = vmatprep.subr.bf16.mxu0 (!%p1074_p1), %v1449_v23 }
 0x112   : > { %v1629_v56 = vpack.c.bf16 %v527_v54, %v526_v51  ;;  %v1147_v57 = vpop.f32.mrb[12].mxu0 }
 0x113   : > { %v512_v58 = vadd.f32 %v1147_v57, %v1057_v14  ;;  %v503_v59 = vpop.f32.mrb[13].mxu0 }
 0x114   : > { %1154 = vmatpush3.bf16.xpose.msra.mxu1 %v1623_v42  ;;  %v504_v60 = vadd.f32 %v1057_v14, %v503_v59  ;;  %v1148_v61 = vpop.f32.mrb[14].mxu0  ;;  %1178 = vmatpush3.bf16.msra.mxu0 (!%p1074_p1), %v1629_v56  ;;  %v645_v59 = vld [vmem:[#allocation4] sm:$0xff] (!%p1074_p1) }
 0x115   : > { %1155 = vmatprep.subr.bf16.mxu1 %v1446_v13  ;;  %v532_v62 = vmax.f32 %v512_v58, 0.0  ;;  %v515_v63 = vadd.f32 %v1148_v61, %v1057_v14  ;;  %v506_v0 = vpop.f32.mrb[15].mxu0  ;;  %1179 = vmatprep.subr.bf16.mxu0 (!%p1074_p1), %v1449_v23  ;;  %v646_v61 = vld [vmem:[#allocation4 + $0x8] sm:$0xff] (!%p1074_p1) }
 0x116   : > { %v530_v1 = vmax.f32 %v504_v60, 0.0  ;;  %v507_v2 = vadd.f32 %v1057_v14, %v506_v0 }
 0x117   : > { %v533_v3 = vmax.f32 %v515_v63, 0.0 }
 0x118   : > { %v531_v4 = vmax.f32 %v507_v2, 0.0  ;;  %1180 = vmatpush3.bf16.msra.mxu0 (!%p1074_p1), %v1627_v55 }
 0x119   : > { %v1633_v5 = vpack.c.bf16 %v533_v3, %v532_v62  ;;  %1181 = vmatprep.subr.bf16.mxu0 (!%p1074_p1), %v1449_v23 }
 0x11a   : > { %v1635_v6 = vpack.c.bf16 %v531_v4, %v530_v1 }
 0x11c   : > { %1156 = vmatpush3.bf16.xpose.msra.mxu1 %v1621_v41  ;;  %1182 = vmatpush3.bf16.msra.mxu0 (!%p1074_p1), %v1635_v6 }
 0x11d   : > { %1157 = vmatprep.subr.bf16.mxu1 %v1446_v13  ;;  %1183 = vmatprep.subr.bf16.mxu0 (!%p1074_p1), %v1449_v23 }
 0x120   : > { %1184 = vmatpush3.bf16.msra.mxu0 (!%p1074_p1), %v1633_v5 }
 0x124   : > { %1158 = vmatpush3.bf16.xpose.msra.mxu1 %v1629_v56 }
 0x125   : > { %1159 = vmatprep.subr.bf16.mxu1 %v1446_v13 }
 0x12c   : > { %1160 = vmatpush3.bf16.xpose.msra.mxu1 %v1627_v55 }
 0x12d   : > { %1161 = vmatprep.subr.bf16.mxu1 %v1446_v13 }
 0x134   : > { %1162 = vmatpush3.bf16.xpose.msra.mxu1 %v1635_v6 }
 0x135   : > { %1163 = vmatprep.subr.bf16.mxu1 %v1446_v13 }
 0x13c   : > { %1164 = vmatpush3.bf16.xpose.msra.mxu1 %v1633_v5 }
 0x143   : > { %1166 = vmatmul.mubr.bf16.vlgmr.msra.gmra.mrb[0].mxu1 %v546_v11 }
 0x213   : > { %591 = sbr.rel (%p1074_p1) target bundleno = 1046 (0x416), region = 52 }
 0x216   : > { %v1652_v12 = vpop.f32.mrb[0].mxu1 }
 0x217   : > { %v1167_v14 = vpop.f32.mrb[1].mxu1  ;;  %v600_v20 = vsel (!%p1074_p1), %vm597_vm3, %v1652_v12, -1e+30 }
 0x218   : > { %v1654_v15 = vpop.f32.mrb[2].mxu1  ;;  %604 = vmax.xlane.f32.xlu0 (!%p1074_p1), %v600_v20 }
 0x219   : > { %v1168_v13 = vpop.f32.mrb[3].mxu1  ;;  %v601_v21 = vsel (!%p1074_p1), %vm597_vm3, %v1654_v15, -1e+30 }
 0x21c   : > { %606 = vmax.xlane.f32.xlu0 %v601_v21 }
 0x2a5   : > { %v605_v25 = vpop.xlane.xlu0 %604 }
 0x2a6   : > { %v608_v26 = vmax.f32 %v602_v24, %v605_v25 }
 0x2a8   : > { %v610_v30 = vsub.f32 %v602_v24, %v608_v26  ;;  %705 = vst.msk [vmem:[#allocation2] sm:$0xff] %vm642_vm4, %v608_v26  ;;  %618 = vperm.xlu1 %1323, %v608_v26  }
 0x2a9   : > { %v607_v31 = vpop.xlane.xlu0 %606 }
 0x2aa   : > { %v609_v32 = vmax.f32 %v603_v29, %v607_v31  ;;  %v612_v46 = vmul.f32 1.442695, %v610_v30 }
 0x2ac   : > { %v611_v33 = vsub.f32 %v603_v29, %v609_v32  ;;  %706 = vst.msk [vmem:[#allocation2 + $0x8] sm:$0xff] %vm642_vm4, %v609_v32  ;;  %623 = vperm.xlu1 %1323, %v609_v32  }
 0x2ae   : > { %v614_v45 = vmul.f32 1.442695, %v611_v33 }
 0x327   : > { %v619_v34 = vpop.permute.xlu1 %618 }
 0x328   : > { %v626_v35 = vsub.f32 %v600_v20, %v619_v34 }
 0x32a   : > { %v628_v36 = vmul.f32 1.442695, %v626_v35 }
 0x32b   : > { %v624_v37 = vpop.permute.xlu1 %623 }
 0x32c   : > { %1325 = vpow2.f32 %v628_v36  ;;  %v627_v38 = vsub.f32 %v601_v21, %v624_v37 }
 0x32e   : > { %v630_v39 = vmul.f32 1.442695, %v627_v38 }
 0x330   : > { %1327 = vpow2.f32 %v630_v39 }
 0x331   : > { %1329 = vpow2.f32 %v614_v45 }
 0x332   : > { %1331 = vpow2.f32 %v612_v46 }
 0x336   : > { %v1326_v40 = vpop.eup %1325 }
 0x337   : > { %636 = vadd.xlane.f32.xlu0 %v1326_v40 }
 0x33a   : > { %v1328_v43 = vpop.eup %1327 }
 0x33b   : > { %638 = vadd.xlane.f32.xlu1 %v1328_v43  ;;  %v659_v44 = vpack.c.bf16 %v1328_v43, %v1326_v40  ;;  %v1330_v47 = vpop.eup %1329 }
 0x33c   : > { %v1332_v48 = vpop.eup %1331  ;;  %v635_v54 = vmul.f32 %v1330_v47, %v633_v52 }
 0x33d   : > { %1186 = vmatmul.mubr.bf16.vlgmr.msra.gmra.mrb[0].mxu0 %v659_v44  ;;  %v634_v50 = vmul.f32 %v1332_v48, %v632_v49 }
 0x34c   : > { %654 = vperm.xlu1 %1323, %v1330_v47  }
 0x34d   : > { %649 = vperm.xlu0 %1324, %v1332_v48  }
 0x3c4   : > { %v637_v51 = vpop.xlane.xlu0 %636 }
 0x3c5   : > { %v640_v53 = vadd.f32 %v637_v51, %v634_v50 }
 0x3c7   : > { %643 = vst.msk [vmem:[#allocation3] sm:$0xff] %vm642_vm4, %v640_v53 }
 0x3c8   : > { %v639_v57 = vpop.xlane.xlu1 %638 }
 0x3c9   : > { %v641_v58 = vadd.f32 %v639_v57, %v635_v54 }
 0x3cb   : > { %644 = vst.msk [vmem:[#allocation3 + $0x8] sm:$0xff] %vm642_vm4, %v641_v58 }
 0x3cc   : > { %v650_v60 = vpop.permute.xlu0 %649  ;;  %v655_v62 = vpop.permute.xlu1 %654 }
 0x3cd   : > { %v657_v63 = vmul.f32 %v650_v60, %v645_v59  ;;  %v658_v1 = vmul.f32 %v655_v62, %v646_v61 }
 0x410   : > { %v694_v0 = vpop.f32.mrb[0].mxu0 }
 0x411   : > { %v701_v2 = vadd.f32 %v694_v0, %v657_v63  ;;  %v1187_v3 = vpop.f32.mrb[1].mxu0 }
 0x412   : > { %v697_v4 = vpop.f32.mrb[2].mxu0 }
 0x413   : > { %703 = vst [vmem:[#allocation4] sm:$0xff] %v701_v2  ;;  %v702_v7 = vadd.f32 %v697_v4, %v658_v1  ;;  %v1188_v8 = vpop.f32.mrb[3].mxu0 }
 0x415   : > { %704 = vst [vmem:[#allocation4 + $0x8] sm:$0xff] %v702_v7 }
 0x416 PF: > { %p1076_p2 = scmp.eq.s32.totalorder %s1426_s27, 3 }
 0x417   : > { %713 = vmax.xlane.f32.xlu0 (!%p1076_p2), %v1652_v12  ;;  %v1451_v9 = vmov (!%p1076_p2), 0   ;;  %v1452_v10 = vmov (!%p1076_p2), 0.0   ;;  %vm751_vm6 = vcmask (!%p1076_p2), 7168   ;;  %vm1453_vm7 = vmmov (!%p1076_p2), 0  }
 0x418   : > { %710 = sbr.rel (%p1076_p2) target bundleno = 1557 (0x615), region = 56  ;;  %1333 = vset.pattern.permute.xlu1 (!%p1076_p2), %v1451_v9  ;;  %1334 = vset.pattern.permute.xlu0 (!%p1076_p2), %v1451_v9 }
 0x419   : > { %1189 = vmatprep.subr.bf16.mxu0 (!%p1076_p2), %v1452_v10  ;;  %1205 = vmatprep.mubr.msk.bf16.mxu0 (!%p1076_p2), %vm1453_vm7, %v1452_v10 }
 0x41a   : > { %1190 = vmatpush3.bf16.msra.mxu0 (!%p1076_p2), %v1617_v28  ;;  %v711_v28 = vld [vmem:[#allocation2] sm:$0xff] (!%p1076_p2) }
 0x41b   : > { %715 = vmax.xlane.f32.xlu0 (!%p1076_p2), %v1654_v15  ;;  %1191 = vmatprep.subr.bf16.mxu0 (!%p1076_p2), %v1452_v10  ;;  %v754_v34 = vld [vmem:[#allocation4] sm:$0xff] (!%p1076_p2) }
 0x41c   : > { %v755_v36 = vld [vmem:[#allocation4 + $0x8] sm:$0xff] (!%p1076_p2) }
 0x41e   : > { %1192 = vmatpush3.bf16.msra.mxu0 (!%p1076_p2), %v1615_v27 }
 0x41f   : > { %1193 = vmatprep.subr.bf16.mxu0 %v1452_v10 }
 0x422   : > { %1194 = vmatpush3.bf16.msra.mxu0 %v1623_v42  ;;  %v712_v42 = vld [vmem:[#allocation2 + $0x8] sm:$0xff] }
 0x423   : > { %1195 = vmatprep.subr.bf16.mxu0 %v1452_v10 }
 0x426   : > { %1196 = vmatpush3.bf16.msra.mxu0 %v1621_v41 }
 0x427   : > { %1197 = vmatprep.subr.bf16.mxu0 %v1452_v10 }
 0x42a   : > { %1198 = vmatpush3.bf16.msra.mxu0 %v1629_v56 }
 0x42b   : > { %1199 = vmatprep.subr.bf16.mxu0 %v1452_v10 }
 0x42e   : > { %1200 = vmatpush3.bf16.msra.mxu0 %v1627_v55 }
 0x42f   : > { %1201 = vmatprep.subr.bf16.mxu0 %v1452_v10 }
 0x432   : > { %1202 = vmatpush3.bf16.msra.mxu0 %v1635_v6 }
 0x433   : > { %1203 = vmatprep.subr.bf16.mxu0 %v1452_v10 }
 0x436   : > { %1204 = vmatpush3.bf16.msra.mxu0 %v1633_v5 }
 0x4a4   : > { %v714_v27 = vpop.xlane.xlu0 %713 }
 0x4a5   : > { %v717_v11 = vmax.f32 %v711_v28, %v714_v27 }
 0x4a7   : > { %v719_v14 = vsub.f32 %v711_v28, %v717_v11  ;;  %814 = vst.msk [vmem:[#allocation2] sm:$0xff] %vm751_vm6, %v717_v11  ;;  %727 = vperm.xlu1 %1333, %v717_v11  }
 0x4a8   : > { %v716_v41 = vpop.xlane.xlu0 %715 }
 0x4a9   : > { %v718_v56 = vmax.f32 %v712_v42, %v716_v41  ;;  %v721_v23 = vmul.f32 1.442695, %v719_v14 }
 0x4ab   : > { %v720_v13 = vsub.f32 %v712_v42, %v718_v56  ;;  %815 = vst.msk [vmem:[#allocation2 + $0x8] sm:$0xff] %vm751_vm6, %v718_v56  ;;  %732 = vperm.xlu1 %1333, %v718_v56  }
 0x4ad   : > { %v723_v22 = vmul.f32 1.442695, %v720_v13 }
 0x526   : > { %v728_v55 = vpop.permute.xlu1 %727 }
 0x527   : > { %v735_v5 = vsub.f32 %v1652_v12, %v728_v55  ;;  %v741_v12 = vld [vmem:[#allocation3] sm:$0xff] }
 0x529   : > { %v737_v6 = vmul.f32 1.442695, %v735_v5 }
 0x52a   : > { %v733_v16 = vpop.permute.xlu1 %732 }
 0x52b   : > { %1335 = vpow2.f32 %v737_v6  ;;  %v736_v17 = vsub.f32 %v1654_v15, %v733_v16  ;;  %v742_v15 = vld [vmem:[#allocation3 + $0x8] sm:$0xff] }
 0x52d   : > { %v739_v18 = vmul.f32 1.442695, %v736_v17 }
 0x52f   : > { %1337 = vpow2.f32 %v739_v18 }
 0x530   : > { %1339 = vpow2.f32 %v723_v22 }
 0x531   : > { %1341 = vpow2.f32 %v721_v23 }
 0x535   : > { %v1336_v19 = vpop.eup %1335 }
 0x536   : > { %745 = vadd.xlane.f32.xlu0 %v1336_v19 }
 0x539   : > { %v1338_v20 = vpop.eup %1337 }
 0x53a   : > { %747 = vadd.xlane.f32.xlu1 %v1338_v20  ;;  %v768_v21 = vpack.c.bf16 %v1338_v20, %v1336_v19  ;;  %v1340_v24 = vpop.eup %1339 }
 0x53b   : > { %v1342_v25 = vpop.eup %1341  ;;  %v744_v31 = vmul.f32 %v1340_v24, %v742_v15 }
 0x53c   : > { %1206 = vmatmul.mubr.bf16.vlgmr.msra.gmra.mrb[0].mxu0 %v768_v21  ;;  %v743_v26 = vmul.f32 %v1342_v25, %v741_v12 }
 0x54b   : > { %763 = vperm.xlu1 %1333, %v1340_v24  }
 0x54c   : > { %758 = vperm.xlu0 %1334, %v1342_v25  }
 0x5c3   : > { %v746_v29 = vpop.xlane.xlu0 %745 }
 0x5c4   : > { %v749_v30 = vadd.f32 %v746_v29, %v743_v26 }
 0x5c6   : > { %752 = vst.msk [vmem:[#allocation3] sm:$0xff] %vm751_vm6, %v749_v30 }
 0x5c7   : > { %v748_v32 = vpop.xlane.xlu1 %747 }
 0x5c8   : > { %v750_v33 = vadd.f32 %v748_v32, %v744_v31 }
 0x5ca   : > { %753 = vst.msk [vmem:[#allocation3 + $0x8] sm:$0xff] %vm751_vm6, %v750_v33 }
 0x5cb   : > { %v759_v35 = vpop.permute.xlu0 %758  ;;  %v764_v37 = vpop.permute.xlu1 %763 }
 0x5cc   : > { %v766_v38 = vmul.f32 %v759_v35, %v754_v34  ;;  %v767_v40 = vmul.f32 %v764_v37, %v755_v36 }
 0x60f   : > { %v803_v39 = vpop.f32.mrb[0].mxu0 }
 0x610   : > { %v810_v43 = vadd.f32 %v803_v39, %v766_v38  ;;  %v1207_v44 = vpop.f32.mrb[1].mxu0 }
 0x611   : > { %v806_v45 = vpop.f32.mrb[2].mxu0 }
 0x612   : > { %812 = vst [vmem:[#allocation4] sm:$0xff] %v810_v43  ;;  %v811_v46 = vadd.f32 %v806_v45, %v767_v40  ;;  %v1208_v47 = vpop.f32.mrb[3].mxu0 }
 0x614   : > { %813 = vst [vmem:[#allocation4 + $0x8] sm:$0xff] %v811_v46 }
 0x615 PF: > { %818 = sbr.rel (%p1074_p1) target bundleno = 1924 (0x784), region = 60  ;;  %v819_v48 = vld [vmem:[#allocation3] sm:$0xff] (!%p1074_p1)  ;;  %v820_v49 = vld [vmem:[#allocation3 + $0x8] sm:$0xff] (!%p1074_p1)  ;;  %v844_v50 = vld [vmem:[%s1821_s4] sm:$0xff] (!%p1074_p1)  ;;  %v1454_v51 = vmov (!%p1074_p1), 0   ;;  %v1455_v52 = vmov (!%p1074_p1), 0.0  }
 0x616   : > { %1343 = vset.pattern.permute.xlu0 (!%p1074_p1), %v1454_v51  ;;  %1344 = vrcp.f32 (!%p1074_p1), %v819_v48  ;;  %1209 = vmatprep.subr.bf16.mxu0 (!%p1074_p1), %v1455_v52  ;;  %v845_v53 = vld [vmem:[%s1821_s4 + $0x8] sm:$0xff] (!%p1074_p1)  ;;  %v846_v54 = vld [vmem:[%s1821_s4 + $0x10] sm:$0xff] (!%p1074_p1)  ;;  %v847_v57 = vld [vmem:[%s1821_s4 + $0x18] sm:$0xff] (!%p1074_p1)  ;;  %vm1456_vm8 = vmmov (!%p1074_p1), 0   ;;  %vm916_vm9 = vcmask (!%p1074_p1), 64512  }
 0x617   : > { %v860_v58 = vpack.c.bf16 (!%p1074_p1), %v845_v53, %v844_v50  ;;  %1346 = vrcp.f32 (!%p1074_p1), %v820_v49  ;;  %v861_v59 = vpack.c.bf16 (!%p1074_p1), %v847_v57, %v846_v54  ;;  %v848_v60 = vld [vmem:[%s1821_s4 + $0x20] sm:$0xff] (!%p1074_p1)  ;;  %v849_v61 = vld [vmem:[%s1821_s4 + $0x28] sm:$0xff] (!%p1074_p1)  ;;  %v850_v63 = vld [vmem:[%s1821_s4 + $0x30] sm:$0xff] (!%p1074_p1)  ;;  %1225 = vmatprep.mubr.msk.bf16.mxu0 (!%p1074_p1), %vm1456_vm8, %v1455_v52 }
 0x618   : > { %v862_v62 = vpack.c.bf16 (!%p1074_p1), %v849_v61, %v848_v60  ;;  %v851_v0 = vld [vmem:[%s1821_s4 + $0x38] sm:$0xff] (!%p1074_p1)  ;;  %v852_v4 = vld [vmem:[%s1821_s4 + $0x40] sm:$0xff] (!%p1074_p1)  ;;  %v853_v7 = vld [vmem:[%s1821_s4 + $0x48] sm:$0xff] (!%p1074_p1) }
 0x619   : > { %1210 = vmatpush3.bf16.msra.mxu0 (!%p1074_p1), %v860_v58  ;;  %v863_v2 = vpack.c.bf16 (!%p1074_p1), %v851_v0, %v850_v63  ;;  %v864_v8 = vpack.c.bf16 (!%p1074_p1), %v853_v7, %v852_v4  ;;  %v854_v9 = vld [vmem:[%s1821_s4 + $0x50] sm:$0xff] (!%p1074_p1)  ;;  %v855_v10 = vld [vmem:[%s1821_s4 + $0x58] sm:$0xff] (!%p1074_p1)  ;;  %v856_v27 = vld [vmem:[%s1821_s4 + $0x60] sm:$0xff] (!%p1074_p1) }
 0x61a   : > { %1211 = vmatprep.subr.bf16.mxu0 (!%p1074_p1), %v1455_v52  ;;  %v865_v28 = vpack.c.bf16 (!%p1074_p1), %v855_v10, %v854_v9  ;;  %v857_v11 = vld [vmem:[%s1821_s4 + $0x68] sm:$0xff] (!%p1074_p1)  ;;  %v858_v14 = vld [vmem:[%s1821_s4 + $0x70] sm:$0xff] (!%p1074_p1)  ;;  %v859_v41 = vld [vmem:[%s1821_s4 + $0x78] sm:$0xff] (!%p1074_p1) }
 0x61b   : > { %v866_v42 = vpack.c.bf16 (!%p1074_p1), %v857_v11, %v856_v27  ;;  %v867_v56 = vpack.c.bf16 (!%p1074_p1), %v859_v41, %v858_v14  ;;  %v825_v13 = vld [vmem:[#allocation4] sm:$0xff] (!%p1074_p1)  ;;  %v826_v16 = vld [vmem:[#allocation4 + $0x8] sm:$0xff] (!%p1074_p1) }
 0x61c   : > { %v823_v55 = vld [vmem:[%s1820_s3] sm:$0xff]  ;;  %v824_v18 = vld [vmem:[%s1820_s3 + $0x8] sm:$0xff] }
 0x61d   : > { %1212 = vmatpush3.bf16.msra.mxu0 %v861_v59  ;;  %v1078_v23 = vld [vmem:[%s1822_s5] ss:$0 sm:$0xff] }
 0x61e   : > { %1213 = vmatprep.subr.bf16.mxu0 %v1455_v52 }
 0x620   : > { %v1345_v1 = vpop.eup %1344 }
 0x621   : > { %829 = vperm.xlu0 %1343, %v1345_v1   ;;  %1214 = vmatpush3.bf16.msra.mxu0 %v862_v62  ;;  %v1347_v3 = vpop.eup %1346 }
 0x622   : > { %1215 = vmatprep.subr.bf16.mxu0 %v1455_v52 }
 0x625   : > { %834 = vperm.xlu0 %1343, %v1347_v3   ;;  %1216 = vmatpush3.bf16.msra.mxu0 %v863_v2 }
 0x626   : > { %1217 = vmatprep.subr.bf16.mxu0 %v1455_v52 }
 0x629   : > { %1218 = vmatpush3.bf16.msra.mxu0 %v864_v8 }
 0x62a   : > { %1219 = vmatprep.subr.bf16.mxu0 %v1455_v52 }
 0x62d   : > { %1220 = vmatpush3.bf16.msra.mxu0 %v865_v28 }
 0x62e   : > { %1221 = vmatprep.subr.bf16.mxu0 %v1455_v52 }
 0x631   : > { %1222 = vmatpush3.bf16.msra.mxu0 %v866_v42 }
 0x632   : > { %1223 = vmatprep.subr.bf16.mxu0 %v1455_v52 }
 0x635   : > { %1224 = vmatpush3.bf16.msra.mxu0 %v867_v56 }
 0x6a0   : > { %v830_v5 = vpop.permute.xlu0 %829 }
 0x6a1   : > { %v837_v6 = vmul.f32 %v830_v5, %v825_v13 }
 0x6a3   : > { %v839_v17 = vadd.f32 %v837_v6, %v823_v55 }
 0x6a4   : > { %v835_v19 = vpop.permute.xlu0 %834 }
 0x6a5   : > { %841 = vst [vmem:[%s1585_s17] sm:$0xff] %v839_v17  ;;  %v838_v20 = vmul.f32 %v835_v19, %v826_v16 }
 0x6a7   : > { %v840_v21 = vadd.f32 %v838_v20, %v824_v18 }
 0x6a9   : > { %842 = vst [vmem:[%s1585_s17 + $0x8] sm:$0xff] %v840_v21  ;;  %v843_v22 = vpack.c.bf16 %v840_v21, %v839_v17 }
 0x6ab   : > { %1226 = vmatmul.mubr.bf16.vlgmr.msra.gmra.mrb[0].mxu0 %v843_v22 }
 0x77e   : > { %v909_v24 = vpop.f32.mrb[0].mxu0 }
 0x77f   : > { %v910_v25 = vadd.f32 %v1078_v23, %v909_v24  ;;  %v1227_v12 = vpop.f32.mrb[1].mxu0 }
 0x780   : > { %v912_v26 = vpop.f32.mrb[2].mxu0 }
 0x781   : > { %917 = vst.msk [vmem:[%s1578_s16] sm:$0xff] %vm916_vm9, %v910_v25  ;;  %v913_v29 = vadd.f32 %v1078_v23, %v912_v26  ;;  %v1228_v15 = vpop.f32.mrb[3].mxu0 }
 0x783   : > { %918 = vst.msk [vmem:[%s1578_s16 + $0x8] sm:$0xff] %vm916_vm9, %v913_v29 }
 0x784 PF: > { %s1085_s10 = sshll.u32 %s1430_s28, 8  ;;  %s938_s30 = sshll.u32 %s1585_s17, 4  ;;  %s1761_s30 = int_to_ptr.vmem [resolvable:$true] %s938_s30 }
 0x785   : > { %s1758_s21 = scalar_lea.hbm %s1823_s6, %s1085_s10  ;;  %s1765_s11 = scalar_lea.sflag [#allocation6], %s293_s18 }
 0x786   : > { %s1348_s16 = scalar_lea.vmem %s1761_s30, 256  ;;  %s1457_s28 = smov [#allocation5]  }
 0x787   : > { %p1349_p4 = scmp.ne.s32.totalorder %s1761_s30, %s1348_s16  ;;  %s1352_s12 = sshll.u32 %s1457_s28, 4  ;;  %s1353_s12 = int_to_ptr.vmem [resolvable:$false] %s1352_s12 }
 0x788   : > { %s1354_s27 = scalar_lea.vmem %s1353_s12, 512  ;;  %p1355_p7 = scmp.lt.s32.totalorder %s1761_s30, %s1353_s12 }
 0x789   : > { %p1350_p5 = pnand %p1349_p4, %p1549_p3  ;;  %p1356_p8 = scmp.lt.s32.totalorder %s1354_s27, %s1348_s16 }
 0x78b   : > { %p1351_p6 = pneg %p1350_p5  ;;  %p1357_p10 = por %p1356_p8, %p1355_p7 }
 0x78d   : > { %p1358_p11 = pnand %p1357_p10, %p1351_p6 }
 0x78f   : > { %1361 = shalt.err (!%p1358_p11)
}
 0x790   : > { %s1362_s17 = scalar_lea.hbm %s1758_s21, 256  ;;  %s1366_s29 = scalar_lea.hbm %s1823_s6, 512 }
 0x791   : > { %p1363_p12 = scmp.ne.s32.totalorder %s1758_s21, %s1362_s17  ;;  %p1367_p1 = scmp.lt.u32.totalorder %s1758_s21, %s1823_s6 }
 0x792   : > { %p1368_p2 = scmp.lt.u32.totalorder %s1366_s29, %s1362_s17  ;;  %p1370_p5 = scmp.lt.u32.totalorder %s1362_s17, %s1758_s21 }
 0x793   : > { %p1364_p13 = pnand %p1363_p12, %p1549_p3 }
 0x794   : > { %p1369_p4 = por %p1368_p2, %p1367_p1 }
 0x795   : > { %p1365_p0 = pneg %p1364_p13 }
 0x796   : > { %p1371_p6 = por %p1370_p5, %p1369_p4 }
 0x798   : > { %p1372_p7 = pnand %p1371_p6, %p1365_p0 }
 0x79a   : > { %1375 = shalt.err (!%p1372_p7)
}
 0x79b   : > { %s1458_s9 = smov 128   ;;  %s1459_s10 = smov 8  }
 0x79c   : > { %1229 = dma.vmem_to_hbm [thread:$0]  (%p1549_p3), %s1761_s30, 256, %s1758_s21, %s1765_s11, %s1458_s9, %s1458_s9, %s1459_s10  }
 0x79d PF: > { %p1235_p8 = scmp.ge.s32.totalorder %s1442_s8, 2  ;;  %s956_s15 = sand.u32 1, %s1414_s24  }
 0x79e   : > { %s957_s19 = scalar_lea.sflag [#allocation6], %s956_s15 }
 0x79f   : > { %p1232_p10 = pnand %p1235_p8, %p1559_p9 }
 0x7a1   : > { %1409 = dma.done.wait (!%p1232_p10), %s957_s19, 256  }
 0x7a2   : > { %1411 = vsyncadd (!%p1232_p10), %s957_s19, 4294967040  ;;  %s21_s8 = sadd.s32 1, %s1442_s8   ;;  %s1835_s16 = sld [smem:[#allocation12_spill]] }
 0x7a3   : > { %p18_p11 = scmp.ge.s32.totalorder %s21_s8, 10   ;;  %s1836_s27 = sld [smem:[#allocation8_spill]] }
 0x7a4   : > { %s1837_s28 = sld [smem:[#allocation9_spill]]  ;;  %s1838_s29 = sld [smem:[#allocation10_spill]] }
 0x7a5   : > { %s1839_s30 = sld [smem:[#allocation11_spill]]  ;;  %s1840_s24 = smov %s1418_s25 }
 0x7a6   : > { %s1841_s25 = smov %s1422_s26  ;;  %20 = sbr.rel (!%p18_p11) target bundleno = 5 (0x5), region = 107 }
 0x7a8   : > { %s1842_s26 = smov %s1835_s16 }
 0x7ad   :  { %970 = vsyncpa [#allocation6], 1 }
 0x7ae   :  { %972 = vsyncpa [#allocation6 + $0x1], 1 }

</bundles_post_ra>
